<compile_context>
chip_gen: v7x
topology: tpu7x:2x2x1
jax: 0.10.0
libtpu: 0.0.40
codegen_flags: <defaults>
</compile_context>

<pallas_src>
import math

import jax
import jax.numpy as jnp
from jax.experimental import pallas as pl
from jax.experimental.pallas import tpu as pltpu

_SUBLANES = 8
_LANES = 128
_VREG = _SUBLANES * _LANES          # 1024 f32 elements = one vreg
_BLOCK_BUDGET_BYTES = 4 << 20       # per-operand block budget before lane tiling kicks in


def add_pe_kernel(x_ref, pe_ref, o_ref):
    # Both refs are sublane-full, lane-dense tiles -> a single unmasked VPU add + vst.
    o_ref[...] = x_ref[...] + pe_ref[...]
    # TODO(synk): training-mode nn.Dropout(p=0.1) not implemented (inference => identity);
    # would use pltpu.prng_seed + pltpu.stateful_bernoulli on the training path.


def make_positional_encoding(max_len, d_model):
    """Exactly mirrors the PyTorch __init__ buffer construction."""
    assert d_model % 2 == 0, "d_model must be even (same constraint as the PyTorch module)"
    position = jnp.arange(max_len, dtype=jnp.float32)[:, None]                      # (L, 1)
    div_term = jnp.exp(jnp.arange(0, d_model, 2, dtype=jnp.float32)
                       * (-math.log(10000.0) / d_model))                            # (D/2,)
    pe = jnp.zeros((max_len, d_model), jnp.float32)
    pe = pe.at[:, 0::2].set(jnp.sin(position * div_term))
    pe = pe.at[:, 1::2].set(jnp.cos(position * div_term))
    return pe[None, :, :]                                                            # (1, L, D)


def positional_encoding_singlevoxel(x, pe):
    """x: (B, S, D) float32, pe: (1, S, D).  Returns x + pe (dropout == identity in eval)."""
    B, S, D = x.shape
    # The PyTorch forward adds the *full* pe buffer (no [:, :S] slice), so seq must equal max_len.
    assert pe.shape == (1, S, D), "forward adds the full buffer: pe must be (1, S, D)"

    # Pre-broadcast pe to the activation shape (trace-time, tiny) so both operands pack into
    # sublane-full vregs regardless of batch size.
    pe_b = jnp.broadcast_to(pe, (B, S, D))

    # Flatten everything and pack into (8, N/8): 8 full sublanes, lane axis a multiple of 128.
    N = B * S * D
    pad = (-N) % _VREG
    xf = x.reshape(N)
    pf = pe_b.reshape(N)
    if pad:
        xf = jnp.pad(xf, (0, pad))
        pf = jnp.pad(pf, (0, pad))
    Np = N + pad
    C = Np // _SUBLANES                   # multiple of 128 -> unmasked lane-dense vst
    x2 = xf.reshape(_SUBLANES, C)
    p2 = pf.reshape(_SUBLANES, C)

    # Single block unless it would blow the VMEM budget (v7x: 64 MiB physical, 32 MiB scoped).
    itemsize = x2.dtype.itemsize
    block_bytes = _SUBLANES * C * itemsize
    n_tiles = 1
    if block_bytes > _BLOCK_BUDGET_BYTES:
        n_tiles = int(pl.next_power_of_2(pl.cdiv(block_bytes, _BLOCK_BUDGET_BYTES)))
        while n_tiles > 1 and C % (n_tiles * _LANES) != 0:
            n_tiles //= 2
    tc = C // n_tiles

    out2 = pl.pallas_call(
        add_pe_kernel,
        out_shape=jax.ShapeDtypeStruct((_SUBLANES, C), x.dtype),
        grid=(n_tiles,),
        in_specs=[
            pl.BlockSpec((_SUBLANES, tc), lambda i: (0, i)),   # activation lane tile
            pl.BlockSpec((_SUBLANES, tc), lambda i: (0, i)),   # pre-broadcast pe lane tile
        ],
        out_specs=pl.BlockSpec((_SUBLANES, tc), lambda i: (0, i)),
        input_output_aliases={0: 0},       # x += pe in place; no separate HBM output alloc
        compiler_params=pltpu.CompilerParams(
            dimension_semantics=(("parallel",) if n_tiles > 1 else ("arbitrary",))),
        cost_estimate=pl.CostEstimate(
            flops=Np, transcendentals=0, bytes_accessed=3 * Np * itemsize),
    )(x2, p2)

    out = out2.reshape(Np)
    if pad:
        out = out[:N]
    return out.reshape(B, S, D)


if __name__ == "__main__":
    # Small shapes consistent with the module: d_model=32, max_len (== seq) = 16, batch = 2.
    B, MAX_LEN, D_MODEL = 2, 16, 32

    key = jax.random.PRNGKey(0)
    x = jax.random.normal(key, (B, MAX_LEN, D_MODEL), jnp.float32)
    pe = make_positional_encoding(MAX_LEN, D_MODEL)

    out = jax.block_until_ready(positional_encoding_singlevoxel(x, pe))

    # Pure-JAX reference check (eval-mode dropout == identity).
    ref = x + pe
    assert out.shape == (B, MAX_LEN, D_MODEL) and out.dtype == jnp.float32
    assert jnp.allclose(out, ref, atol=1e-6, rtol=1e-6)
    print("KERNEL_OK")
</pallas_src>

<mosaic_0001>
module attributes {stable_mosaic.version = 11 : i64} {
  func.func @add_pe_kernel(%arg0: i32, %arg1: memref<8x128xf32, #tpu.memory_space<vmem>>, %arg2: memref<8x128xf32, #tpu.memory_space<vmem>>, %arg3: memref<8x128xf32, #tpu.memory_space<vmem>>) attributes {dimension_semantics = [#tpu.dimension_semantics<arbitrary>], iteration_bounds = array<i64: 1>, scalar_prefetch = 0 : i64, scratch_operands = 0 : i64, tpu.core_type = #tpu.core_type<tc>, window_params = [{transform_indices = @transform_0, window_bounds = array<i64: 8, 128>}, {transform_indices = @transform_1, window_bounds = array<i64: 8, 128>}, {transform_indices = @transform_2, window_bounds = array<i64: 8, 128>}]} {
    %c0 = arith.constant 0 : index
    %c0_0 = arith.constant 0 : index
    %0 = vector.load %arg1[%c0, %c0_0] : memref<8x128xf32, #tpu.memory_space<vmem>>, vector<8x128xf32>
    %c0_1 = arith.constant 0 : index
    %c0_2 = arith.constant 0 : index
    %1 = vector.load %arg2[%c0_1, %c0_2] : memref<8x128xf32, #tpu.memory_space<vmem>>, vector<8x128xf32>
    %2 = arith.addf %0, %1 : vector<8x128xf32>
    %c0_3 = arith.constant 0 : index
    %c0_4 = arith.constant 0 : index
    %3 = vector.load %arg3[%c0_3, %c0_4] : memref<8x128xf32, #tpu.memory_space<vmem>>, vector<8x128xf32>
    tpu.vector_store %arg3[%c0_3, %c0_4], %2 {strides = array<i32>} : memref<8x128xf32, #tpu.memory_space<vmem>>, vector<8x128xf32>,
    return
  }
  func.func @transform_0(%arg0: i32) -> (i32, i32) {
    %c0_i32 = arith.constant 0 : i32
    %c0_i32_0 = arith.constant 0 : i32
    return %c0_i32, %arg0 : i32, i32
  }
  func.func @transform_1(%arg0: i32) -> (i32, i32) {
    %c0_i32 = arith.constant 0 : i32
    %c0_i32_0 = arith.constant 0 : i32
    return %c0_i32, %arg0 : i32, i32
  }
  func.func @transform_2(%arg0: i32) -> (i32, i32) {
    %c0_i32 = arith.constant 0 : i32
    %c0_i32_0 = arith.constant 0 : i32
    return %c0_i32, %arg0 : i32, i32
  }
}

</mosaic_0001>

<bundles_post_ra>
// kernel: tpu_custom_call.1
= control target key start
LH: loop header
LB: loop body
LE: loop exit
PB: predicated region body
PF: predicated region fallthrough
CT: control target
= control target key end

     0   :  { %7 = vsyncpa [#allocation3], 0  ;;  %s137_s0 = inlined_call_operand.hbm [shape: f32[8,128], index: 0, kind: input, shape index: {}, may-alias: {0,2}]   ;;  %s138_s1 = inlined_call_operand.vmem [shape: f32[8,128], index: 1, kind: input, shape index: {}]   ;;  %s139_s2 = inlined_call_operand.hbm [shape: f32[8,128], index: 2, kind: output, shape index: {}, may-alias: {0,2}]  }
   0x1   :  { %8 = vsyncpa [#allocation4], 0  ;;  %s93_s9 = smov [#allocation2]   ;;  %s45_s13 = scalar_lea.hbm %s137_s0, 128 }
   0x2   :  { %s15_s10 = sshll.u32 %s93_s9, 4  ;;  %p46_p0 = scmp.ne.s32.totalorder %s137_s0, %s45_s13  ;;  %s16_s10 = int_to_ptr.vmem [resolvable:$true] %s15_s10 }
   0x3   :  { %p49_p1 = scmp.lt.u32.totalorder %s45_s13, %s137_s0 }
   0x5   :  { %p51_p2 = pnand %p49_p1, %p46_p0 }
   0x7   :  { %54 = shalt.err (!%p51_p2)
}
   0x8   :  { %s55_s18 = scalar_lea.vmem %s16_s10, 128  ;;  %p60_p4 = scmp.lt.s32.totalorder %s16_s10, %s16_s10 }
   0x9   :  { %p56_p3 = scmp.ne.s32.totalorder %s16_s10, %s55_s18  ;;  %p61_p5 = scmp.lt.s32.totalorder %s55_s18, %s55_s18 }
   0xb   :  { %p62_p6 = por %p61_p5, %p60_p4 }
   0xd   :  { %p63_p7 = pnand %p62_p6, %p56_p3 }
   0xf   :  { %66 = shalt.err (!%p63_p7)
}
  0x10   :  { %18 = dma.hbm_to_vmem [thread:$0]  %s137_s0, 128, %s16_s10, [#allocation3]  }
  0x11   :  { %89 = dma.done.wait [#allocation3], 128  }
  0x12   :  { %90 = vsyncadd [#allocation3], 4294967168  ;;  %s94_s21 = smov [#allocation5]   ;;  %v24_v0 = vld [vmem:[#allocation2] sm:$0xff] }
  0x13   :  { %s34_s22 = sshll.u32 %s94_s21, 4  ;;  %v25_v1 = vld [vmem:[%s138_s1] sm:$0xff]  ;;  %s35_s22 = int_to_ptr.vmem [resolvable:$true] %s34_s22 }
  0x14   :  { %v26_v2 = vadd.f32 %v25_v1, %v24_v0  ;;  %s67_s25 = scalar_lea.vmem %s35_s22, 128  ;;  %p72_p9 = scmp.lt.s32.totalorder %s35_s22, %s35_s22 }
  0x15   :  { %p68_p8 = scmp.ne.s32.totalorder %s35_s22, %s67_s25  ;;  %p73_p10 = scmp.lt.s32.totalorder %s67_s25, %s67_s25 }
  0x16   :  { %27 = vst [vmem:[#allocation5] sm:$0xff] %v26_v2 }
  0x17   :  { %p74_p11 = por %p73_p10, %p72_p9 }
  0x19   :  { %p75_p12 = pnand %p74_p11, %p68_p8 }
  0x1b   :  { %78 = shalt.err (!%p75_p12)
}
  0x1c   :  { %s79_s27 = scalar_lea.hbm %s139_s2, 128 }
  0x1d   :  { %p80_p13 = scmp.ne.s32.totalorder %s139_s2, %s79_s27  ;;  %p83_p0 = scmp.lt.u32.totalorder %s79_s27, %s139_s2 }
  0x1f   :  { %p85_p1 = pnand %p83_p0, %p80_p13 }
  0x21   :  { %88 = shalt.err (!%p85_p1)
}
  0x22   :  { %37 = dma.vmem_to_hbm [thread:$0]  %s35_s22, 128, %s139_s2, [#allocation4]  }
  0x23   :  { %91 = dma.done.wait [#allocation4], 128  }
  0x24   :  { %92 = vsyncadd [#allocation4], 4294967168 }
  0x25   :  { %41 = vsyncpa [#allocation3], 1 }
  0x26   :  { %42 = vsyncpa [#allocation4], 1 }

</bundles_post_ra>
